<compile_context>
chip_gen: v7x
topology: tpu7x:2x2x1
jax: 0.10.0
libtpu: 0.0.40
codegen_flags: <defaults>
</compile_context>

<pallas_src>
import functools
import math

import numpy as np
import jax
import jax.numpy as jnp
from jax import lax
from jax.experimental import pallas as pl
from jax.experimental.pallas import tpu as pltpu


def _conv_block_kernel(xcol_ref, mask_ref, w1_ref, b1_ref, w2_ref, b2_ref,
                       feat_ref, m_scr, *, L, B):
    """Both conv blocks (conv+BN+ReLU+maxpool) for a block of B batch elements,
    fully vectorized across the batch (one matmul per conv layer per block).

    xcol_ref: (B*L, 3*Cin)  im2col-ed zero-padded input rows (conv1 pad=1 pre-applied)
    mask_ref: (B*L, 4)      batch-boundary keep masks (1.0 keep / 0.0 drop):
                            col0/1 = prev/next tap at level 1 (all B*L rows),
                            col2/3 = prev/next tap at level 2 (first B*L/2 rows).
    w1_ref:   (3*Cin, 64)   conv1 weight in im2col layout, BN1 scale folded in
    b1_ref:   (1, 64)       folded BN1 bias
    w2_ref:   (192, 64)     conv2 weight in im2col layout, BN2 scale folded in
    b2_ref:   (1, 64)       folded BN2 bias
    feat_ref: (B*L//4, 64)  pooled block-2 output, rows = (batch-major, length), chan last
    m_scr:    VMEM (B*L,64) scratch feeding the stride-2 decimation reads

    NOTE: zero is used as the maxpool pad value; valid ONLY because every pool input is
    post-ReLU (>= 0). Zero IS the exact conv padding value, so conv2 taps are exact.
    """
    R1 = B * L
    R2 = R1 // 2
    R4 = R1 // 4
    C = 64

    w1 = w1_ref[...]
    b1 = b1_ref[...]
    w2 = w2_ref[...]
    b2 = b2_ref[...]
    kp1 = mask_ref[:, 0:1]               # (R1, 1) keep-prev, level 1
    kn1 = mask_ref[:, 1:2]               # (R1, 1) keep-next, level 1
    kp2 = mask_ref[0:R2, 2:3]            # (R2, 1) keep-prev, level 2
    kn2 = mask_ref[0:R2, 3:4]            # (R2, 1) keep-next, level 2
    zrow = jnp.zeros((1, C), jnp.float32)

    # ---- conv1 (k=3, pad=1) + folded BN1 + ReLU: one matmul for the whole block ----
    y1 = jnp.dot(xcol_ref[...], w1, preferred_element_type=jnp.float32) + b1
    y1 = jnp.maximum(y1, 0.0)                                          # (R1, 64)

    # ---- maxpool1 (k=3, s=2, pad=1): shifted max w/ boundary mask, stride-2 read ----
    prev1 = jnp.concatenate([zrow, y1[:R1 - 1]], axis=0) * kp1
    next1 = jnp.concatenate([y1[1:], zrow], axis=0) * kn1
    m_scr[...] = jnp.maximum(jnp.maximum(prev1, y1), next1)
    p1 = m_scr[pl.ds(0, R2, stride=2), :]                              # (R2, 64)

    # ---- conv2 (k=3, pad=1) + folded BN2 + ReLU: im2col taps, one matmul ----
    prev2 = jnp.concatenate([zrow, p1[:R2 - 1]], axis=0) * kp2
    next2 = jnp.concatenate([p1[1:], zrow], axis=0) * kn2
    lhs2 = jnp.concatenate([prev2, p1, next2], axis=1)                 # (R2, 192)
    y2 = jnp.dot(lhs2, w2, preferred_element_type=jnp.float32) + b2
    y2 = jnp.maximum(y2, 0.0)                                          # (R2, 64)

    # ---- maxpool2 ----
    prev3 = jnp.concatenate([zrow, y2[:R2 - 1]], axis=0) * kp2
    next3 = jnp.concatenate([y2[1:], zrow], axis=0) * kn2
    m_scr[0:R2, :] = jnp.maximum(jnp.maximum(prev3, y2), next3)
    feat_ref[...] = m_scr[pl.ds(0, R4, stride=2), :]                   # (R4, 64)


def _fc_kernel(f_ref, w1_ref, b1_ref, w2_ref, b2_ref, w3_ref, b3_ref, out_ref):
    """MLP head on a tile of batch rows. BN3/BN4 folded into (w1,b1)/(w2,b2); dropout
    is identity (eval). fc3 weight/bias/output padded to 128 classes (lane-dense)."""
    z = jnp.dot(f_ref[...], w1_ref[...], preferred_element_type=jnp.float32) + b1_ref[...]
    z = jnp.maximum(z, 0.0)
    z = jnp.dot(z, w2_ref[...], preferred_element_type=jnp.float32) + b2_ref[...]
    z = jnp.maximum(z, 0.0)
    out_ref[...] = jnp.dot(z, w3_ref[...], preferred_element_type=jnp.float32) + b3_ref[...]


def allworth_forward(x, params):
    """x: (N, Cin, L) float32 in PyTorch NCL layout. Returns (N, n_classes)."""
    N, Cin, L = x.shape
    assert L % 4 == 0, "input_size must be divisible by 4"
    L2, L4 = L // 2, L // 4
    F = 64 * L4
    eps = 1e-5

    def bn_fold(p):
        gamma, beta, mean, var = p
        s = gamma / jnp.sqrt(var + eps)
        return s, beta - mean * s

    s1, t1 = bn_fold(params["bn1"])
    s2, t2 = bn_fold(params["bn2"])
    s3, t3 = bn_fold(params["bn3"])
    s4, t4 = bn_fold(params["bn4"])

    # conv weights: torch (Cout, Cin, K) -> im2col (K*Cin, Cout); BN scale folded per out chan.
    w1 = (jnp.transpose(params["conv1_w"], (2, 1, 0)) * s1[None, None, :]).reshape(3 * Cin, 64)
    w2 = (jnp.transpose(params["conv2_w"], (2, 1, 0)) * s2[None, None, :]).reshape(3 * 64, 64)
    b1 = t1.reshape(1, 64)
    b2 = t2.reshape(1, 64)

    # ---- batch-block size: ~512 rows per grid step, all block dims (8,128)-aligned ----
    base = 32 // math.gcd(L, 32)                 # smallest B with (B*L) % 32 == 0
    mult = max(1, (512 // L) // base)
    blk = min(base * mult, 64)
    blk = min(blk, base * (-(-N // base)))       # don't exceed the (padded) batch
    Np = -(-N // blk) * blk

    # channels-last + conv1 im2col (pad=1) done in XLA glue; rows flattened batch-major.
    x_nlc = jnp.transpose(x, (0, 2, 1)).astype(jnp.float32)            # (N, L, Cin)
    xp = jnp.pad(x_nlc, ((0, Np - N), (1, 1), (0, 0)))                 # (Np, L+2, Cin)
    xcol = jnp.concatenate([xp[:, 0:L, :], xp[:, 1:L + 1, :], xp[:, 2:L + 2, :]], axis=2)
    xcol = xcol.reshape(Np * L, 3 * Cin)

    # batch-boundary keep-masks (built once on host; same pattern every grid step).
    r1 = np.arange(blk * L)
    r2 = np.arange(blk * L2)
    masks = np.ones((blk * L, 4), np.float32)
    masks[:, 0] = (r1 % L) != 0
    masks[:, 1] = (r1 % L) != (L - 1)
    masks[:blk * L2, 2] = (r2 % L2) != 0
    masks[:blk * L2, 3] = (r2 % L2) != (L2 - 1)
    masks = jnp.asarray(masks)

    feats = pl.pallas_call(
        functools.partial(_conv_block_kernel, L=L, B=blk),
        out_shape=jax.ShapeDtypeStruct((Np * L4, 64), jnp.float32),
        grid_spec=pltpu.PrefetchScalarGridSpec(
            num_scalar_prefetch=0,
            grid=(Np // blk,),
            in_specs=[
                pl.BlockSpec((blk * L, 3 * Cin), lambda n: (n, 0)),
                pl.BlockSpec((blk * L, 4), lambda n: (0, 0)),
                pl.BlockSpec((3 * Cin, 64), lambda n: (0, 0)),
                pl.BlockSpec((1, 64), lambda n: (0, 0)),
                pl.BlockSpec((3 * 64, 64), lambda n: (0, 0)),
                pl.BlockSpec((1, 64), lambda n: (0, 0)),
            ],
            out_specs=pl.BlockSpec((blk * L4, 64), lambda n: (n, 0)),
            scratch_shapes=[pltpu.VMEM((blk * L, 64), jnp.float32)],
        ),
        compiler_params=pltpu.CompilerParams(
            dimension_semantics=("parallel",),
            vmem_limit_bytes=32 * 1024 * 1024,
        ),
    )(xcol, masks, w1, b1, w2, b2)

    # Flatten: kernel features are (length, channel) order -> flat index l*64 + c.
    feat_flat = feats.reshape(Np, F)

    # fc1: permute rows from torch flatten order (c*L4 + l) to ours (l*64 + c); fold BN3/BN4.
    perm = (jnp.arange(64)[None, :] * L4 + jnp.arange(L4)[:, None]).reshape(-1)
    fw1 = params["fc1_w"].T[perm, :] * s3[None, :]                     # (F, 512)
    fb1 = (params["fc1_b"] * s3 + t3).reshape(1, 512)
    fw2 = params["fc2_w"].T * s4[None, :]                              # (512, 128)
    fb2 = (params["fc2_b"] * s4 + t4).reshape(1, 128)

    # fc3: pad class dim to a multiple of 128 so output stores are unmasked / MXU N is full.
    n_classes = params["fc3_w"].shape[0]
    NC = -(-n_classes // 128) * 128
    fw3 = jnp.zeros((128, NC), jnp.float32).at[:, :n_classes].set(params["fc3_w"].T)
    fb3 = jnp.zeros((1, NC), jnp.float32).at[:, :n_classes].set(params["fc3_b"][None, :])

    # Row tile for the MLP head (parallel over batch; weights stay resident in VMEM).
    tn = Np
    for t in (512, 256, 128, 64, 32, 16, 8):
        if Np % t == 0:
            tn = t
            break
    # TODO(synk): for very large input_size (fw1 approaching the VMEM limit) the fc1
    # reduction dim should additionally be tiled with an accumulator + pl.when.

    out = pl.pallas_call(
        _fc_kernel,
        out_shape=jax.ShapeDtypeStruct((Np, NC), jnp.float32),
        grid_spec=pltpu.PrefetchScalarGridSpec(
            num_scalar_prefetch=0,
            grid=(Np // tn,),
            in_specs=[
                pl.BlockSpec((tn, F), lambda i: (i, 0)),
                pl.BlockSpec((F, 512), lambda i: (0, 0)),
                pl.BlockSpec((1, 512), lambda i: (0, 0)),
                pl.BlockSpec((512, 128), lambda i: (0, 0)),
                pl.BlockSpec((1, 128), lambda i: (0, 0)),
                pl.BlockSpec((128, NC), lambda i: (0, 0)),
                pl.BlockSpec((1, NC), lambda i: (0, 0)),
            ],
            out_specs=pl.BlockSpec((tn, NC), lambda i: (i, 0)),
        ),
        compiler_params=pltpu.CompilerParams(
            dimension_semantics=("parallel",),
            vmem_limit_bytes=32 * 1024 * 1024,
        ),
    )(feat_flat, fw1, fb1, fw2, fb2, fw3, fb3)
    return out[:N, :n_classes]


def init_params(key, in_channels, input_size, n_classes):
    ks = jax.random.split(key, 12)
    F = 64 * input_size // 4

    def normal(k, shape, scale):
        return scale * jax.random.normal(k, shape, dtype=jnp.float32)

    def bn(k, c):
        k1, k2, k3, k4 = jax.random.split(k, 4)
        gamma = 1.0 + 0.1 * jax.random.normal(k1, (c,), jnp.float32)
        beta = 0.1 * jax.random.normal(k2, (c,), jnp.float32)
        mean = 0.1 * jax.random.normal(k3, (c,), jnp.float32)
        var = jax.random.uniform(k4, (c,), jnp.float32, minval=0.5, maxval=1.5)
        return gamma, beta, mean, var

    return {
        "conv1_w": normal(ks[0], (64, in_channels, 3), 0.3),
        "bn1": bn(ks[1], 64),
        "conv2_w": normal(ks[2], (64, 64, 3), 0.1),
        "bn2": bn(ks[3], 64),
        "fc1_w": normal(ks[4], (512, F), 0.05),
        "fc1_b": normal(ks[5], (512,), 0.05),
        "bn3": bn(ks[6], 512),
        "fc2_w": normal(ks[7], (128, 512), 0.05),
        "fc2_b": normal(ks[8], (128,), 0.05),
        "bn4": bn(ks[9], 128),
        "fc3_w": normal(ks[10], (n_classes, 128), 0.05),
        "fc3_b": normal(ks[11], (n_classes,), 0.05),
    }


def reference_forward(x, params):
    """Pure-JAX reference matching PyTorch eval() semantics."""
    eps = 1e-5

    def bn_c(h, p):  # h: (N, C, L)
        gamma, beta, mean, var = p
        s = gamma / jnp.sqrt(var + eps)
        return h * s[None, :, None] + (beta - mean * s)[None, :, None]

    def bn_f(z, p):  # z: (N, C)
        gamma, beta, mean, var = p
        s = gamma / jnp.sqrt(var + eps)
        return z * s[None, :] + (beta - mean * s)[None, :]

    def conv1d(h, w):
        return lax.conv_general_dilated(h, w, (1,), [(1, 1)],
                                        dimension_numbers=("NCH", "OIH", "NCH"))

    def maxpool(h):
        return lax.reduce_window(h, -jnp.inf, lax.max, (1, 1, 3), (1, 1, 2),
                                 [(0, 0), (0, 0), (1, 1)])

    h = x.astype(jnp.float32)
    h = maxpool(jnp.maximum(bn_c(conv1d(h, params["conv1_w"]), params["bn1"]), 0.0))
    h = maxpool(jnp.maximum(bn_c(conv1d(h, params["conv2_w"]), params["bn2"]), 0.0))
    f = h.reshape(h.shape[0], -1)
    z = jnp.maximum(bn_f(f @ params["fc1_w"].T + params["fc1_b"], params["bn3"]), 0.0)
    z = jnp.maximum(bn_f(z @ params["fc2_w"].T + params["fc2_b"], params["bn4"]), 0.0)
    return z @ params["fc3_w"].T + params["fc3_b"]


if __name__ == "__main__":
    N, Cin, L, n_classes = 2, 4, 16, 10
    key = jax.random.PRNGKey(0)
    kx, kp = jax.random.split(key)
    x = jax.random.normal(kx, (N, Cin, L), dtype=jnp.float32)
    params = init_params(kp, Cin, L, n_classes)

    out = allworth_forward(x, params)
    out = jax.block_until_ready(out)

    ref = reference_forward(x, params)
    np.testing.assert_allclose(np.asarray(out), np.asarray(ref), rtol=2e-2, atol=2e-2)
    print("KERNEL_OK")
</pallas_src>

<mosaic_0001>
module attributes {stable_mosaic.version = 11 : i64} {
  func.func @_conv_block_kernel(%arg0: i32, %arg1: memref<32x12xf32, #tpu.memory_space<vmem>>, %arg2: memref<32x4xf32, #tpu.memory_space<vmem>>, %arg3: memref<12x64xf32, #tpu.memory_space<vmem>>, %arg4: memref<1x64xf32, #tpu.memory_space<vmem>>, %arg5: memref<192x64xf32, #tpu.memory_space<vmem>>, %arg6: memref<1x64xf32, #tpu.memory_space<vmem>>, %arg7: memref<8x64xf32, #tpu.memory_space<vmem>>, %arg8: memref<32x64xf32, #tpu.memory_space<vmem>>) attributes {dimension_semantics = [#tpu.dimension_semantics<parallel>], iteration_bounds = array<i64: 1>, scalar_prefetch = 0 : i64, scratch_operands = 1 : i64, tpu.core_type = #tpu.core_type<tc>, window_params = [{transform_indices = @transform_0, window_bounds = array<i64: 32, 12>}, {pipeline_mode = #tpu.pipeline_mode<synchronous>, transform_indices = @transform_1, window_bounds = array<i64: 32, 4>}, {pipeline_mode = #tpu.pipeline_mode<synchronous>, transform_indices = @transform_2, window_bounds = array<i64: 12, 64>}, {pipeline_mode = #tpu.pipeline_mode<synchronous>, transform_indices = @transform_3, window_bounds = array<i64: 1, 64>}, {pipeline_mode = #tpu.pipeline_mode<synchronous>, transform_indices = @transform_4, window_bounds = array<i64: 192, 64>}, {pipeline_mode = #tpu.pipeline_mode<synchronous>, transform_indices = @transform_5, window_bounds = array<i64: 1, 64>}, {transform_indices = @transform_6, window_bounds = array<i64: 8, 64>}]} {
    %c0 = arith.constant 0 : index
    %c0_0 = arith.constant 0 : index
    %0 = vector.load %arg3[%c0, %c0_0] : memref<12x64xf32, #tpu.memory_space<vmem>>, vector<12x64xf32>
    %c0_1 = arith.constant 0 : index
    %c0_2 = arith.constant 0 : index
    %1 = vector.load %arg4[%c0_1, %c0_2] : memref<1x64xf32, #tpu.memory_space<vmem>>, vector<1x64xf32>
    %c0_3 = arith.constant 0 : index
    %c0_4 = arith.constant 0 : index
    %2 = vector.load %arg5[%c0_3, %c0_4] : memref<192x64xf32, #tpu.memory_space<vmem>>, vector<192x64xf32>
    %c0_5 = arith.constant 0 : index
    %c0_6 = arith.constant 0 : index
    %3 = vector.load %arg6[%c0_5, %c0_6] : memref<1x64xf32, #tpu.memory_space<vmem>>, vector<1x64xf32>
    %c0_7 = arith.constant 0 : index
    %c0_8 = arith.constant 0 : index
    %4 = vector.load %arg2[%c0_7, %c0_8] : memref<32x4xf32, #tpu.memory_space<vmem>>, vector<32x1xf32>
    %c0_9 = arith.constant 0 : index
    %c1 = arith.constant 1 : index
    %5 = vector.load %arg2[%c0_9, %c1] : memref<32x4xf32, #tpu.memory_space<vmem>>, vector<32x1xf32>
    %c0_10 = arith.constant 0 : index
    %c2 = arith.constant 2 : index
    %6 = vector.load %arg2[%c0_10, %c2] : memref<32x4xf32, #tpu.memory_space<vmem>>, vector<16x1xf32>
    %c0_11 = arith.constant 0 : index
    %c3 = arith.constant 3 : index
    %7 = vector.load %arg2[%c0_11, %c3] : memref<32x4xf32, #tpu.memory_space<vmem>>, vector<16x1xf32>
    %cst = arith.constant 0.000000e+00 : f32
    %8 = vector.broadcast %cst : f32 to vector<1x64xf32>
    %c0_12 = arith.constant 0 : index
    %c0_13 = arith.constant 0 : index
    %9 = vector.load %arg1[%c0_12, %c0_13] : memref<32x12xf32, #tpu.memory_space<vmem>>, vector<32x12xf32>
    %cst_14 = arith.constant dense<0.000000e+00> : vector<32x64xf32>
    %10 = tpu.matmul %9, %0, %cst_14 {dimension_numbers = #tpu.dot_dimension_numbers<[1], [0], [0], [1], [0, 0, 1, 1], [], []>} : vector<32x12xf32>, vector<12x64xf32>, vector<32x64xf32> -> vector<32x64xf32>
    %11 = vector.broadcast %1 : vector<1x64xf32> to vector<32x64xf32>
    %12 = arith.addf %10, %11 : vector<32x64xf32>
    %cst_15 = arith.constant 0.000000e+00 : f32
    %13 = vector.broadcast %cst_15 : f32 to vector<32x64xf32>
    %14 = arith.maximumf %12, %13 : vector<32x64xf32>
    %15 = vector.extract_strided_slice %14 {offsets = [0, 0], sizes = [31, 64], strides = [1, 1]} : vector<32x64xf32> to vector<31x64xf32>
    %16 = tpu.concatenate %8, %15 in 0 : vector<1x64xf32>, vector<31x64xf32> -> vector<32x64xf32>
    %17 = vector.broadcast %4 : vector<32x1xf32> to vector<32x64xf32>
    %18 = arith.mulf %16, %17 : vector<32x64xf32>
    %19 = vector.extract_strided_slice %14 {offsets = [1, 0], sizes = [31, 64], strides = [1, 1]} : vector<32x64xf32> to vector<31x64xf32>
    %20 = tpu.concatenate %19, %8 in 0 : vector<31x64xf32>, vector<1x64xf32> -> vector<32x64xf32>
    %21 = vector.broadcast %5 : vector<32x1xf32> to vector<32x64xf32>
    %22 = arith.mulf %20, %21 : vector<32x64xf32>
    %23 = arith.maximumf %18, %14 : vector<32x64xf32>
    %24 = arith.maximumf %23, %22 : vector<32x64xf32>
    %c0_16 = arith.constant 0 : index
    %c0_17 = arith.constant 0 : index
    %25 = vector.load %arg8[%c0_16, %c0_17] : memref<32x64xf32, #tpu.memory_space<vmem>>, vector<32x64xf32>
    tpu.vector_store %arg8[%c0_16, %c0_17], %24 {strides = array<i32>} : memref<32x64xf32, #tpu.memory_space<vmem>>, vector<32x64xf32>,
    %c0_18 = arith.constant 0 : index
    %c0_19 = arith.constant 0 : index
    %26 = tpu.strided_load %arg8[%c0_18, %c0_19] {strides = array<i32: 2, 1>} : memref<32x64xf32, #tpu.memory_space<vmem>>, vector<16x64xf32>
    %27 = vector.extract_strided_slice %26 {offsets = [0, 0], sizes = [15, 64], strides = [1, 1]} : vector<16x64xf32> to vector<15x64xf32>
    %28 = tpu.concatenate %8, %27 in 0 : vector<1x64xf32>, vector<15x64xf32> -> vector<16x64xf32>
    %29 = vector.broadcast %6 : vector<16x1xf32> to vector<16x64xf32>
    %30 = arith.mulf %28, %29 : vector<16x64xf32>
    %31 = vector.extract_strided_slice %26 {offsets = [1, 0], sizes = [15, 64], strides = [1, 1]} : vector<16x64xf32> to vector<15x64xf32>
    %32 = tpu.concatenate %31, %8 in 0 : vector<15x64xf32>, vector<1x64xf32> -> vector<16x64xf32>
    %33 = vector.broadcast %7 : vector<16x1xf32> to vector<16x64xf32>
    %34 = arith.mulf %32, %33 : vector<16x64xf32>
    %35 = tpu.concatenate %30, %26, %34 in 1 : vector<16x64xf32>, vector<16x64xf32>, vector<16x64xf32> -> vector<16x192xf32>
    %cst_20 = arith.constant dense<0.000000e+00> : vector<16x64xf32>
    %36 = tpu.matmul %35, %2, %cst_20 {dimension_numbers = #tpu.dot_dimension_numbers<[1], [0], [0], [1], [0, 0, 1, 1], [], []>} : vector<16x192xf32>, vector<192x64xf32>, vector<16x64xf32> -> vector<16x64xf32>
    %37 = vector.broadcast %3 : vector<1x64xf32> to vector<16x64xf32>
    %38 = arith.addf %36, %37 : vector<16x64xf32>
    %cst_21 = arith.constant 0.000000e+00 : f32
    %39 = vector.broadcast %cst_21 : f32 to vector<16x64xf32>
    %40 = arith.maximumf %38, %39 : vector<16x64xf32>
    %41 = vector.extract_strided_slice %40 {offsets = [0, 0], sizes = [15, 64], strides = [1, 1]} : vector<16x64xf32> to vector<15x64xf32>
    %42 = tpu.concatenate %8, %41 in 0 : vector<1x64xf32>, vector<15x64xf32> -> vector<16x64xf32>
    %43 = vector.broadcast %6 : vector<16x1xf32> to vector<16x64xf32>
    %44 = arith.mulf %42, %43 : vector<16x64xf32>
    %45 = vector.extract_strided_slice %40 {offsets = [1, 0], sizes = [15, 64], strides = [1, 1]} : vector<16x64xf32> to vector<15x64xf32>
    %46 = tpu.concatenate %45, %8 in 0 : vector<15x64xf32>, vector<1x64xf32> -> vector<16x64xf32>
    %47 = vector.broadcast %7 : vector<16x1xf32> to vector<16x64xf32>
    %48 = arith.mulf %46, %47 : vector<16x64xf32>
    %49 = arith.maximumf %44, %40 : vector<16x64xf32>
    %50 = arith.maximumf %49, %48 : vector<16x64xf32>
    %c0_22 = arith.constant 0 : index
    %c0_23 = arith.constant 0 : index
    %51 = vector.load %arg8[%c0_22, %c0_23] : memref<32x64xf32, #tpu.memory_space<vmem>>, vector<16x64xf32>
    tpu.vector_store %arg8[%c0_22, %c0_23], %50 {strides = array<i32>} : memref<32x64xf32, #tpu.memory_space<vmem>>, vector<16x64xf32>,
    %c0_24 = arith.constant 0 : index
    %c0_25 = arith.constant 0 : index
    %52 = tpu.strided_load %arg8[%c0_24, %c0_25] {strides = array<i32: 2, 1>} : memref<32x64xf32, #tpu.memory_space<vmem>>, vector<8x64xf32>
    %c0_26 = arith.constant 0 : index
    %c0_27 = arith.constant 0 : index
    %53 = vector.load %arg7[%c0_26, %c0_27] : memref<8x64xf32, #tpu.memory_space<vmem>>, vector<8x64xf32>
    tpu.vector_store %arg7[%c0_26, %c0_27], %52 {strides = array<i32>} : memref<8x64xf32, #tpu.memory_space<vmem>>, vector<8x64xf32>,
    return
  }
  func.func @transform_0(%arg0: i32) -> (i32, i32) {
    %c0_i32 = arith.constant 0 : i32
    %c0_i32_0 = arith.constant 0 : i32
    return %arg0, %c0_i32 : i32, i32
  }
  func.func @transform_1(%arg0: i32) -> (i32, i32) {
    %c0_i32 = arith.constant 0 : i32
    %c0_i32_0 = arith.constant 0 : i32
    %c0_i32_1 = arith.constant 0 : i32
    return %c0_i32, %c0_i32_0 : i32, i32
  }
  func.func @transform_2(%arg0: i32) -> (i32, i32) {
    %c0_i32 = arith.constant 0 : i32
    %c0_i32_0 = arith.constant 0 : i32
    %c0_i32_1 = arith.constant 0 : i32
    return %c0_i32, %c0_i32_0 : i32, i32
  }
  func.func @transform_3(%arg0: i32) -> (i32, i32) {
    %c0_i32 = arith.constant 0 : i32
    %c0_i32_0 = arith.constant 0 : i32
    %c0_i32_1 = arith.constant 0 : i32
    return %c0_i32, %c0_i32_0 : i32, i32
  }
  func.func @transform_4(%arg0: i32) -> (i32, i32) {
    %c0_i32 = arith.constant 0 : i32
    %c0_i32_0 = arith.constant 0 : i32
    %c0_i32_1 = arith.constant 0 : i32
    return %c0_i32, %c0_i32_0 : i32, i32
  }
  func.func @transform_5(%arg0: i32) -> (i32, i32) {
    %c0_i32 = arith.constant 0 : i32
    %c0_i32_0 = arith.constant 0 : i32
    %c0_i32_1 = arith.constant 0 : i32
    return %c0_i32, %c0_i32_0 : i32, i32
  }
  func.func @transform_6(%arg0: i32) -> (i32, i32) {
    %c0_i32 = arith.constant 0 : i32
    %c0_i32_0 = arith.constant 0 : i32
    return %arg0, %c0_i32 : i32, i32
  }
}

</mosaic_0001>

<bundles_post_ra>
// kernel: tpu_custom_call.1
= control target key start
LH: loop header
LB: loop body
LE: loop exit
PB: predicated region body
PF: predicated region fallthrough
CT: control target
= control target key end

     0   :  { %vm79_vm0 = vcmask 1043456   ;;  %vm540_vm1 = vmmov 1   ;;  %vm66_vm3 = vcmask 97280   ;;  %v541_v4 = vmov 0   ;;  %s734_s0 = inlined_call_operand.vmem [shape: f32[32,12], index: 0, kind: input, shape index: {}]   ;;  %s735_s1 = inlined_call_operand.vmem [shape: f32[32,4], index: 1, kind: input, shape index: {}]   ;;  %s736_s2 = inlined_call_operand.vmem [shape: f32[12,64], index: 2, kind: input, shape index: {}]   ;;  %s737_s3 = inlined_call_operand.vmem [shape: f32[1,64], index: 3, kind: input, shape index: {}]   ;;  %s738_s4 = inlined_call_operand.vmem [shape: f32[192,64], index: 4, kind: input, shape index: {}]   ;;  %s739_s5 = inlined_call_operand.vmem [shape: f32[1,64], index: 5, kind: input, shape index: {}]   ;;  %s740_s6 = inlined_call_operand.hbm [shape: f32[8,64], index: 6, kind: output, shape index: {}]  }
   0x1   :  { %v24_v0 = vld [vmem:[%s736_s2] sm:$0xff]  ;;  %v25_v1 = vld [vmem:[%s736_s2 + $0x8] sm:$0xf]  ;;  %vm459_vm2 = vmpackc.low %vm79_vm0, %vm540_vm1  ;;  %508 = vset.pattern.permute.xlu0 %v541_v4 }
   0x2   :  { %v56_v2 = vld [vmem:[%s734_s0] sm:$0xff]  ;;  %v458_v3 = vpack.c.bf16 %v25_v1, %v24_v0 }
   0x3   :  { %452 = vmatprep.mubr.msk.f32.mxu0 %vm66_vm3, %v56_v2  ;;  %v52_v5 = vld [vmem:[%s735_s1] sm:$0xff] }
   0x4   :  { %460 = vmatprep.subr.msk.bf16.mxu0 %vm459_vm2, %v458_v3  ;;  %191 = vperm.xlu0 %508, %v52_v5  }
   0x5   :  { %11 = vsyncpa [#allocation4], 0  ;;  %463 = vmatpush3.bf16.msk.msra.mxu0 %vm459_vm2, %v458_v3  ;;  %v57_v6 = vld [vmem:[%s734_s0 + $0x8] sm:$0xff]  ;;  %v542_v7 = vmov 1   ;;  %v58_v9 = vld [vmem:[%s734_s0 + $0x10] sm:$0xff]  ;;  %v543_v13 = vmov 3  }
   0x6   :  { %509 = vset.pattern.permute.xlu1 %v542_v7  ;;  %v53_v8 = vld [vmem:[%s735_s1 + $0x8] sm:$0xff]  ;;  %v59_v10 = vld [vmem:[%s734_s0 + $0x18] sm:$0xff]  ;;  %v54_v11 = vld [vmem:[%s735_s1 + $0x10] sm:$0xff]  ;;  %v544_v14 = vmov 2   ;;  %v545_v18 = vmov 0.0|0.0   ;;  %vm176_vm4 = vcmask 1040384  }
   0x7   :  { %227 = vperm.xlu1 %509, %v52_v5   ;;  %v55_v12 = vld [vmem:[%s735_s1 + $0x18] sm:$0xff]  ;;  %v27_v15 = vld [vmem:[%s738_s4] sm:$0xff]  ;;  %v28_v16 = vld [vmem:[%s738_s4 + $0x8] sm:$0xff]  ;;  %464 = vmatprep.subr.bf16.mxu1 %v545_v18  ;;  %vm213_vm5 = vcmask 1046528   ;;  %vm254_vm6 = vcmask 523264  }
   0x8   :  { %453 = vmatmul.mubr.msk.f32.vlgmr.msra.gmra.mrb[0].mxu0 %vm66_vm3, %v57_v6  ;;  %196 = vperm.xlu0 %508, %v53_v8   ;;  %v29_v17 = vld [vmem:[%s738_s4 + $0x10] sm:$0xff]  ;;  %v465_v19 = vpack.c.bf16 %v28_v16, %v27_v15  ;;  %v30_v20 = vld [vmem:[%s738_s4 + $0x18] sm:$0xff]  ;;  %v31_v22 = vld [vmem:[%s738_s4 + $0x20] sm:$0xff] }
   0x9   :  { %455 = vmatprep.mubr.msk.f32.mxu0 %vm66_vm3, %v58_v9  ;;  %v468_v21 = vpack.c.bf16 %v30_v20, %v29_v17  ;;  %v32_v23 = vld [vmem:[%s738_s4 + $0x28] sm:$0xff]  ;;  %v33_v25 = vld [vmem:[%s738_s4 + $0x30] sm:$0xff]  ;;  %v34_v26 = vld [vmem:[%s738_s4 + $0x38] sm:$0xff] }
   0xa   :  { %466 = vmatpush1.bf16.msra.mxu1 %v465_v19  ;;  %v471_v24 = vpack.c.bf16 %v32_v23, %v31_v22  ;;  %v474_v27 = vpack.c.bf16 %v34_v26, %v33_v25  ;;  %v35_v28 = vld [vmem:[%s738_s4 + $0x40] sm:$0xff]  ;;  %v36_v29 = vld [vmem:[%s738_s4 + $0x48] sm:$0xff]  ;;  %v37_v31 = vld [vmem:[%s738_s4 + $0x50] sm:$0xff] }
   0xb   :  { %231 = vperm.xlu1 %509, %v53_v8   ;;  %467 = vmatprep.subr.bf16.mxu1 %v545_v18  ;;  %v477_v30 = vpack.c.bf16 %v36_v29, %v35_v28  ;;  %v38_v32 = vld [vmem:[%s738_s4 + $0x58] sm:$0xff]  ;;  %v39_v34 = vld [vmem:[%s738_s4 + $0x60] sm:$0xff]  ;;  %v40_v35 = vld [vmem:[%s738_s4 + $0x68] sm:$0xff] }
   0xc   :  { %456 = vmatmul.mubr.msk.f32.gmra.mrb[2].mxu0 %vm66_vm3, %v59_v10  ;;  %201 = vperm.xlu0 %508, %v54_v11   ;;  %v480_v33 = vpack.c.bf16 %v38_v32, %v37_v31  ;;  %v483_v36 = vpack.c.bf16 %v40_v35, %v39_v34  ;;  %v41_v37 = vld [vmem:[%s738_s4 + $0x70] sm:$0xff]  ;;  %v42_v38 = vld [vmem:[%s738_s4 + $0x78] sm:$0xff]  ;;  %v43_v40 = vld [vmem:[%s738_s4 + $0x80] sm:$0xff] }
   0xd   :  { %v486_v39 = vpack.c.bf16 %v42_v38, %v41_v37  ;;  %v44_v41 = vld [vmem:[%s738_s4 + $0x88] sm:$0xff]  ;;  %v45_v43 = vld [vmem:[%s738_s4 + $0x90] sm:$0xff]  ;;  %v46_v44 = vld [vmem:[%s738_s4 + $0x98] sm:$0xff] }
   0xe   :  { %469 = vmatpush1.bf16.msra.mxu1 %v468_v21  ;;  %v489_v42 = vpack.c.bf16 %v44_v41, %v43_v40  ;;  %v492_v45 = vpack.c.bf16 %v46_v44, %v45_v43  ;;  %v47_v46 = vld [vmem:[%s738_s4 + $0xa0] sm:$0xff]  ;;  %v48_v47 = vld [vmem:[%s738_s4 + $0xa8] sm:$0xff]  ;;  %v49_v49 = vld [vmem:[%s738_s4 + $0xb0] sm:$0xff] }
   0xf   :  { %510 = vset.pattern.permute.xlu1 %v541_v4  ;;  %470 = vmatprep.subr.bf16.mxu1 %v545_v18  ;;  %v495_v48 = vpack.c.bf16 %v48_v47, %v47_v46  ;;  %v50_v50 = vld [vmem:[%s738_s4 + $0xb8] sm:$0xff]  ;;  %v433_v54 = vld [vmem:[%s737_s3] ss:$0 sm:$0xff]  ;;  %s546_s3 = smov 64  }
  0x10   :  { %206 = vperm.xlu1 %510, %v55_v12   ;;  %511 = vset.pattern.permute.xlu0 %v542_v7  ;;  %v498_v51 = vpack.c.bf16 %v50_v50, %v49_v49 }
  0x11   :  { %235 = vperm.xlu0 %511, %v54_v11  }
  0x12   :  { %472 = vmatpush1.bf16.msra.mxu1 %v471_v24 }
  0x13   :  { %473 = vmatprep.subr.bf16.mxu1 %v545_v18 }
  0x14   :  { %512 = vset.pattern.permute.xlu1 %v542_v7 }
  0x15   :  { %239 = vperm.xlu1 %512, %v55_v12   ;;  %514 = vset.pattern.permute.xlu0 %v543_v13 }
  0x16   :  { %287 = vperm.xlu0 %514, %v52_v5   ;;  %475 = vmatpush1.bf16.msra.mxu1 %v474_v27 }
  0x17   :  { %476 = vmatprep.subr.bf16.mxu1 %v545_v18 }
  0x19   :  { %513 = vset.pattern.permute.xlu1 %v544_v14 }
  0x1a   :  { %271 = vperm.xlu1 %513, %v52_v5   ;;  %478 = vmatpush1.bf16.msra.mxu1 %v477_v30 }
  0x1b   :  { %479 = vmatprep.subr.bf16.mxu1 %v545_v18 }
  0x1e   :  { %275 = vperm.xlu1 %513, %v53_v8   ;;  %481 = vmatpush1.bf16.msra.mxu1 %v480_v33 }
  0x1f   :  { %482 = vmatprep.subr.bf16.mxu1 %v545_v18 }
  0x22   :  { %515 = vset.pattern.permute.xlu1 %v543_v13  ;;  %484 = vmatpush1.bf16.msra.mxu1 %v483_v36 }
  0x23   :  { %291 = vperm.xlu1 %515, %v53_v8   ;;  %485 = vmatprep.subr.bf16.mxu1 %v545_v18 }
  0x26   :  { %487 = vmatpush1.bf16.msra.mxu1 %v486_v39 }
  0x27   :  { %488 = vmatprep.subr.bf16.mxu1 %v545_v18 }
  0x2a   :  { %490 = vmatpush1.bf16.msra.mxu1 %v489_v42 }
  0x2b   :  { %491 = vmatprep.subr.bf16.mxu1 %v545_v18 }
  0x2e   :  { %493 = vmatpush1.bf16.msra.mxu1 %v492_v45 }
  0x2f   :  { %494 = vmatprep.subr.bf16.mxu1 %v545_v18 }
  0x32   :  { %496 = vmatpush1.bf16.msra.mxu1 %v495_v48 }
  0x33   :  { %497 = vmatprep.subr.bf16.mxu1 %v545_v18 }
  0x36   :  { %499 = vmatpush1.bf16.msra.mxu1 %v498_v51 }
  0x83   :  { %v192_v53 = vpop.permute.xlu0 %191 }
  0x86   :  { %v228_v52 = vpop.permute.xlu1 %227 }
  0x87   :  { %v197_v60 = vpop.permute.xlu0 %196 }
  0x8a   :  { %v232_v56 = vpop.permute.xlu1 %231 }
  0x8b   :  { %v202_v15 = vpop.permute.xlu0 %201 }
  0x8f   :  { %v207_v7 = vpop.permute.xlu1 %206 }
  0x90   :  { %v236_v31 = vpop.permute.xlu0 %235 }
  0x94   :  { %v240_v25 = vpop.permute.xlu1 %239 }
  0x95   :  { %v288_v44 = vpop.permute.xlu0 %287 }
  0x99   :  { %v272_v48 = vpop.permute.xlu1 %271 }
  0x9d   :  { %v276_v50 = vpop.permute.xlu1 %275 }
  0xdb   :  { %v454_v55 = vpop.f32.mrb[0].mxu0 }
  0xdc   :  { %v155_v57 = vadd.f32 %v454_v55, %v433_v54  ;;  %v149_v58 = vpop.f32.mrb[1].mxu0 }
  0xdd   :  { %v150_v59 = vadd.f32 %v433_v54, %v149_v58 }
  0xde   :  { %v169_v61 = vmax.f32 %v155_v57, 0.0 }
  0xdf   :  { %v168_v62 = vmax.f32 %v150_v59, 0.0  ;;  %v457_v63 = vpop.f32.mrb[2].mxu0 }
  0xe0   :  { %v178_v0 = vrot.slane %v169_v61, 7  ;;  %v215_v1 = vrot.slane %v169_v61, 1  ;;  %v165_v2 = vadd.f32 %v457_v63, %v433_v54  ;;  %v159_v3 = vpop.f32.mrb[3].mxu0  ;;  %v439_v63 = vld [vmem:[%s739_s5] ss:$0 sm:$0xff]  ;;  %s547_s5 = smov [#allocation3]  }
  0xe1   :  { %v177_v4 = vrot.slane %v168_v62, 7  ;;  %v214_v5 = vrot.slane %v168_v62, 1  ;;  %v160_v6 = vadd.f32 %v433_v54, %v159_v3  ;;  %s425_s13 = sshll.u32 %s547_s5, 4  ;;  %s426_s13 = int_to_ptr.vmem [resolvable:$true] %s425_s13 }
  0xe2   :  { %v171_v8 = vmax.f32 %v165_v2, 0.0  ;;  %s516_s14 = scalar_lea.vmem %s426_s13, 128  ;;  %p521_p1 = scmp.lt.s32.totalorder %s426_s13, %s426_s13 }
  0xe3   :  { %v179_v9 = vsel %vm176_vm4, %v177_v4, %v178_v0  ;;  %v188_v10 = vsel %vm176_vm4, 0.0, %v177_v4  ;;  %v216_v11 = vsel %vm213_vm5, %v214_v5, %v215_v1  ;;  %v170_v12 = vmax.f32 %v160_v6, 0.0  ;;  %p517_p0 = scmp.ne.s32.totalorder %s426_s13, %s516_s14  ;;  %p522_p2 = scmp.lt.s32.totalorder %s516_s14, %s516_s14 }
  0xe4   :  { %v209_v13 = vmul.f32 %v192_v53, %v188_v10  ;;  %v210_v14 = vmul.f32 %v197_v60, %v179_v9  ;;  %v182_v16 = vrot.slane %v171_v8, 7  ;;  %v219_v19 = vrot.slane %v171_v8, 1  ;;  %v292_v53 = vpop.permute.xlu1 %291 }
  0xe5   :  { %v180_v17 = vrot.slane %v170_v12, 7  ;;  %v217_v18 = vrot.slane %v170_v12, 1  ;;  %v242_v20 = vmul.f32 %v228_v52, %v216_v11  ;;  %p523_p3 = por %p522_p2, %p521_p1 }
  0xe6   :  { %v246_v21 = vmax.f32 %v209_v13, %v168_v62  ;;  %v247_v22 = vmax.f32 %v210_v14, %v169_v61  ;;  %v225_v26 = vsel %vm213_vm5, %v219_v19, 0.0 }
  0xe7   :  { %v218_v23 = vsel %vm213_vm5, %v215_v1, %v217_v18  ;;  %v183_v24 = vsel %vm176_vm4, %v180_v17, %v182_v16  ;;  %v181_v27 = vsel %vm176_vm4, %v178_v0, %v180_v17  ;;  %v220_v33 = vsel %vm213_vm5, %v217_v18, %v219_v19  ;;  %p524_p4 = pnand %p523_p3, %p517_p0 }
  0xe8   :  { %v250_v28 = vmax.f32 %v246_v21, %v242_v20  ;;  %v243_v29 = vmul.f32 %v232_v56, %v218_v23  ;;  %v212_v30 = vmul.f32 %v207_v7, %v183_v24  ;;  %v211_v32 = vmul.f32 %v202_v15, %v181_v27 }
  0xe9   :  { %v245_v36 = vmul.f32 %v240_v25, %v225_v26  ;;  %v244_v37 = vmul.f32 %v236_v31, %v220_v33 }
  0xea   :  { %255 = vst.msk [vmem:[#allocation2] sm:$0xff] %vm254_vm6, %v250_v28  ;;  %v251_v34 = vmax.f32 %v247_v22, %v243_v29  ;;  %v249_v35 = vmax.f32 %v212_v30, %v171_v8  ;;  %v248_v38 = vmax.f32 %v211_v32, %v170_v12 }
  0xec   :  { %256 = vst.msk [vmem:[#allocation2 + $0x8] sm:$0xff] %vm254_vm6, %v251_v34  ;;  %v253_v39 = vmax.f32 %v249_v35, %v245_v36  ;;  %v252_v40 = vmax.f32 %v248_v38, %v244_v37 }
  0xee   :  { %258 = vst.msk [vmem:[#allocation2 + $0x18] sm:$0xff] %vm254_vm6, %v253_v39  ;;  %257 = vst.msk [vmem:[#allocation2 + $0x10] sm:$0xff] %vm254_vm6, %v252_v40 }
  0xf3   :  { %v259_v41 = vld [vmem:[#allocation2] ss:$2 sm:$0xff] }
  0xf4   :  { %296 = vrot.lane.b32.xlu0 %v259_v41, %s546_s3  ;;  %v280_v45 = vrot.slane %v259_v41, 1  ;;  %v264_v49 = vrot.slane %v259_v41, 7 }
  0xf5   :  { %v261_v42 = vld [vmem:[#allocation2 + $0x10] ss:$2 sm:$0xff] }
  0xf6   :  { %298 = vrot.lane.b32.xlu1 %v261_v42, %s546_s3  ;;  %v281_v43 = vrot.slane %v261_v42, 1  ;;  %v269_v51 = vsel %vm176_vm4, 0.0, %v264_v49  ;;  %v265_v52 = vrot.slane %v261_v42, 7 }
  0xf7   :  { %v278_v55 = vmul.f32 %v272_v48, %v269_v51 }
  0xf8   :  { %v282_v46 = vsel %vm213_vm5, %v280_v45, %v281_v43  ;;  %v285_v54 = vsel %vm213_vm5, %v281_v43, 0.0  ;;  %v266_v56 = vsel %vm176_vm4, %v264_v49, %v265_v52 }
  0xf9   :  { %v294_v47 = vmul.f32 %v288_v44, %v282_v46  ;;  %v295_v58 = vmul.f32 %v292_v53, %v285_v54  ;;  %v279_v60 = vmul.f32 %v276_v50, %v266_v56 }
  0xfb   :  { %440 = vmatprep.mubr.msk.f32.mxu1 %vm254_vm6, %v294_v47 }
 0x166   :  { %v297_v57 = vpop.permute.xlu0 %296 }
 0x167   :  { %v302_v59 = vsel %vm254_vm6, %v278_v55, %v297_v57 }
 0x168   :  { %381 = vmatmul.mubr.f32.vlgmr.msra.gmra.mrb[0].mxu1 %v302_v59  ;;  %v299_v61 = vpop.permute.xlu1 %298 }
 0x169   :  { %441 = vmatprep.mubr.msk.f32.mxu1 %vm254_vm6, %v295_v58  ;;  %v303_v62 = vsel %vm254_vm6, %v279_v60, %v299_v61 }
 0x16c   :  { %386 = vmatmul.mubr.f32.gmra.mrb[2].mxu1 %v303_v62 }
 0x23b   :  { %v382_v0 = vpop.f32.mrb[0].mxu1 }
 0x23c   :  { %v383_v1 = vadd.f32 %v439_v63, %v382_v0  ;;  %v384_v2 = vpop.f32.mrb[1].mxu1 }
 0x23e   :  { %v391_v3 = vmax.f32 %v383_v1, 0.0 }
 0x23f   :  { %v387_v4 = vpop.f32.mrb[2].mxu1 }
 0x240   :  { %v395_v5 = vrot.slane %v391_v3, 7  ;;  %v388_v6 = vadd.f32 %v439_v63, %v387_v4  ;;  %v389_v7 = vpop.f32.mrb[3].mxu1  ;;  %v403_v11 = vrot.slane %v391_v3, 1 }
 0x242   :  { %v400_v8 = vsel %vm176_vm4, 0.0, %v395_v5  ;;  %v392_v9 = vmax.f32 %v388_v6, 0.0 }
 0x243   :  { %v401_v10 = vmul.f32 %v400_v8, %v272_v48 }
 0x244   :  { %v396_v12 = vrot.slane %v392_v9, 7  ;;  %v404_v13 = vrot.slane %v392_v9, 1 }
 0x245   :  { %v411_v17 = vmax.f32 %v401_v10, %v391_v3 }
 0x246   :  { %v397_v14 = vsel %vm176_vm4, %v395_v5, %v396_v12  ;;  %v405_v15 = vsel %vm213_vm5, %v403_v11, %v404_v13  ;;  %v408_v16 = vsel %vm213_vm5, %v404_v13, 0.0 }
 0x247   :  { %v402_v18 = vmul.f32 %v397_v14, %v276_v50  ;;  %v409_v19 = vmul.f32 %v405_v15, %v288_v44  ;;  %v410_v20 = vmul.f32 %v408_v16, %v292_v53 }
 0x249   :  { %v412_v21 = vmax.f32 %v402_v18, %v392_v9  ;;  %v413_v22 = vmax.f32 %v411_v17, %v409_v19 }
 0x24b   :  { %v414_v23 = vmax.f32 %v412_v21, %v410_v20  ;;  %415 = vst.msk [vmem:[#allocation2] sm:$0xff] %vm254_vm6, %v413_v22 }
 0x24d   :  { %416 = vst.msk [vmem:[#allocation2 + $0x8] sm:$0xff] %vm254_vm6, %v414_v23 }
 0x254   :  { %v417_v24 = vld [vmem:[#allocation2] ss:$2 sm:$0xff] }
 0x255   :  { %418 = vst.msk [vmem:[#allocation3] sm:$0xff] %vm254_vm6, %v417_v24 }
 0x256   :  { %527 = shalt.err (!%p524_p4)
}
 0x257   :  { %s528_s16 = scalar_lea.hbm %s740_s6, 128 }
 0x258   :  { %p529_p5 = scmp.ne.s32.totalorder %s740_s6, %s528_s16  ;;  %p532_p6 = scmp.lt.u32.totalorder %s528_s16, %s740_s6 }
 0x25a   :  { %p534_p7 = pnand %p532_p6, %p529_p5 }
 0x25c   :  { %537 = shalt.err (!%p534_p7)
}
 0x25d   :  { %428 = dma.vmem_to_hbm [thread:$0]  %s426_s13, 128, %s740_s6, [#allocation4]  }
 0x25e   :  { %538 = dma.done.wait [#allocation4], 128  }
 0x25f   :  { %539 = vsyncadd [#allocation4], 4294967168 }
 0x260   :  { %432 = vsyncpa [#allocation4], 1 }

</bundles_post_ra>
